<compile_context>
chip_gen: v6e
topology: v6e:2x2x1
jax: 0.10.0
libtpu: 0.0.40
codegen_flags: <defaults>
</compile_context>

<pallas_src>
import jax
import jax.numpy as jnp
from jax import lax
from jax.experimental import pallas as pl
from jax.experimental.pallas import tpu as pltpu


def gconv_stats_kernel(xim_ref, w_ref, y_ref, stats_ref):
    """Pass 1: grouped conv as one im2col matmul + per-tile BN partial sums.

    xim_ref:   (bt, T, K*i_nc)  im2col'd 'same'-padded input               (bf16)
    w_ref:     (K*i_nc, o_nc)   block-diag gconv weight, output columns
                                already in channel_shuffle order           (bf16)
    y_ref:     (bt, T, o_nc)    raw gconv output                           (f32)
    stats_ref: (1, 2, o_nc)     per-tile [sum ; sum of squares]            (f32)
    """
    bt, T, kin = xim_ref.shape
    o_nc = w_ref.shape[1]
    y = jnp.dot(xim_ref[...].reshape(bt * T, kin), w_ref[...],
                preferred_element_type=jnp.float32)            # (bt*T, o_nc)
    y_ref[...] = y.reshape(bt, T, o_nc)
    stats_ref[...] = jnp.concatenate(
        [jnp.sum(y, axis=0, keepdims=True),
         jnp.sum(y * y, axis=0, keepdims=True)], axis=0)[None]


def bn_tgconv_kernel(y_ref, scale_ref, shift_ref, wt_ref, bias_ref, l_ref, g_ref):
    """Pass 2: BN (global stats, affine) + ReLU (= l_feat) + tgconv matmul.

    y_ref:     (bt, T, o_nc)    raw gconv output                           (f32)
    scale_ref: (1, o_nc)        gamma * rsqrt(var + eps), shuffled order   (f32)
    shift_ref: (1, o_nc)        beta - mean * scale, shuffled order        (f32)
    wt_ref:    (T*o_nc, o_out)  tgconv weight, row index = t*o_nc + c      (bf16)
    bias_ref:  (1, o_out)       tgconv bias                                (f32)
    l_ref:     (bt, T, o_nc)    l_feat slab (batch, time, channel)         (f32)
    g_ref:     (1, bt, o_out)   g_feat slab                                (f32)
    """
    bt, T, o_nc = y_ref.shape
    o_out = bias_ref.shape[1]
    z = jnp.maximum(y_ref[...].reshape(bt * T, o_nc) * scale_ref[...]
                    + shift_ref[...], 0.0)                     # (bt*T, o_nc) = l_feat
    l_ref[...] = z.reshape(bt, T, o_nc)
    zg = z.reshape(bt, T * o_nc).astype(jnp.bfloat16)          # one bf16 cast
    g = jnp.dot(zg, wt_ref[...], preferred_element_type=jnp.float32)
    g_ref[...] = (g + bias_ref[...]).reshape(1, bt, o_out)


def tagg_block_forward(x, wg, gamma, beta, wt, tbias, L, *, batch_tile=None, eps=1e-5):
    """x: (B, i_nc, T); wg: (o_nc, i_nc//L, K); gamma/beta: (o_nc,);
    wt: (o_nc//L, o_nc, T); tbias: (o_nc//L,).
    Returns (l_feat (B, o_nc, T), g_feat (B, o_nc//L, 1))."""
    B, i_nc, T = x.shape
    o_nc, icg, K = wg.shape
    ocg = o_nc // L
    o_out = wt.shape[0]
    pad = (K - 1) // 2
    kin = K * i_nc

    # ---- host-side weight / layout prep (vectorized; weight-only) ----
    # TODO(synk): cache this prep across calls instead of re-tracing every forward.
    j = jnp.arange(o_nc)
    perm = (j % L) * ocg + (j // L)            # shuffled column j <- original perm[j]
    eye = jnp.eye(L, dtype=wg.dtype)
    wg_g = wg.reshape(L, ocg, icg, K)
    # Block-diagonal per-tap weight: W[k, g*icg+i, h*ocg+o] = (g==h) * wg[h*ocg+o, i, k]
    wblk = jnp.einsum('gh,goik->kgiho', eye, wg_g).reshape(K, i_nc, o_nc)
    # Fold channel_shuffle into output columns, flatten taps for the im2col dot.
    wflat = wblk[:, :, perm].reshape(kin, o_nc).astype(jnp.bfloat16)
    # TODO(synk): for large L with i_nc/L >= ~128, switch to per-group dots to
    # avoid the (L-1)/L zero padding in this dense block-diagonal weight.

    gamma_s = gamma.astype(jnp.float32)[perm]
    beta_s = beta.astype(jnp.float32)[perm]

    # tgconv weight flattened so row index = t*o_nc + shuffled_channel.
    wt_flat = jnp.transpose(wt, (2, 1, 0)).reshape(T * o_nc, o_out).astype(jnp.bfloat16)
    tb2 = tbias.astype(jnp.float32).reshape(1, o_out)

    # ---- im2col input: 'same' pad, NCT -> (B, T, K*i_nc), one XLA concat ----
    xpt = jnp.transpose(jnp.pad(x, ((0, 0), (0, 0), (pad, pad))), (0, 2, 1))
    xim = jnp.concatenate([xpt[:, k:k + T, :] for k in range(K)],
                          axis=-1).astype(jnp.bfloat16)        # (B, T, K*i_nc)

    # ---- batch tile: largest divisor of B with <= ~512 rows per tile (v7x-safe VMEM) ----
    if batch_tile is None:
        batch_tile = 1
        for d in range(1, B + 1):
            if B % d == 0 and d * T <= max(T, 512):
                batch_tile = d
    assert B % batch_tile == 0
    nbt = B // batch_tile

    cparams = pltpu.CompilerParams(
        dimension_semantics=("parallel",),     # shards the tile grid across v7x's 2 TCs
        vmem_limit_bytes=48 * 1024 * 1024)

    # ---- pass 1: gconv (single im2col matmul) + per-tile BN partial sums ----
    y, stats = pl.pallas_call(
        gconv_stats_kernel,
        out_shape=(jax.ShapeDtypeStruct((B, T, o_nc), jnp.float32),
                   jax.ShapeDtypeStruct((nbt, 2, o_nc), jnp.float32)),
        grid=(nbt,),
        in_specs=[pl.BlockSpec((batch_tile, T, kin), lambda i: (i, 0, 0)),
                  pl.BlockSpec((kin, o_nc), lambda i: (0, 0))],
        out_specs=(pl.BlockSpec((batch_tile, T, o_nc), lambda i: (i, 0, 0)),
                   pl.BlockSpec((1, 2, o_nc), lambda i: (i, 0, 0))),
        compiler_params=cparams,
    )(xim, wflat)

    # ---- tiny global BN reduction + scale/shift in XLA (2*o_nc numbers) ----
    # TODO(synk): running_mean/running_var update (training side effect) not emitted.
    tot = jnp.sum(stats, axis=0)               # (2, o_nc)
    n = float(B * T)
    mean = tot[0] / n
    var = jnp.maximum(tot[1] / n - mean * mean, 0.0)   # clamp before rsqrt
    scale = (gamma_s * lax.rsqrt(var + eps)).reshape(1, o_nc)
    shift = (beta_s - mean * scale[0]).reshape(1, o_nc)

    # ---- pass 2: normalize + ReLU (= l_feat) + single tgconv matmul ----
    l_btc, g3 = pl.pallas_call(
        bn_tgconv_kernel,
        out_shape=(jax.ShapeDtypeStruct((B, T, o_nc), jnp.float32),
                   jax.ShapeDtypeStruct((nbt, batch_tile, o_out), jnp.float32)),
        grid=(nbt,),
        in_specs=[pl.BlockSpec((batch_tile, T, o_nc), lambda i: (i, 0, 0)),
                  pl.BlockSpec((1, o_nc), lambda i: (0, 0)),
                  pl.BlockSpec((1, o_nc), lambda i: (0, 0)),
                  pl.BlockSpec((T * o_nc, o_out), lambda i: (0, 0)),
                  pl.BlockSpec((1, o_out), lambda i: (0, 0))],
        out_specs=(pl.BlockSpec((batch_tile, T, o_nc), lambda i: (i, 0, 0)),
                   pl.BlockSpec((1, batch_tile, o_out), lambda i: (i, 0, 0))),
        compiler_params=cparams,
    )(y, scale, shift, wt_flat, tb2)

    # NCT transpose once, outside the kernel (XLA).
    l_feat = jnp.transpose(l_btc, (0, 2, 1))   # (B, o_nc, T)
    g_feat = g3.reshape(B, o_out, 1)
    return l_feat, g_feat


def ref_forward(x, wg, gamma, beta, wt, tbias, L, eps=1e-5):
    """Pure-JAX reference mirroring the PyTorch forward (training-mode BN)."""
    pad = (wg.shape[2] - 1) // 2
    y = lax.conv_general_dilated(x, wg, window_strides=(1,), padding=((pad, pad),),
                                 dimension_numbers=('NCH', 'OIH', 'NCH'),
                                 feature_group_count=L)
    mean = jnp.mean(y, axis=(0, 2), keepdims=True)
    var = jnp.mean((y - mean) ** 2, axis=(0, 2), keepdims=True)
    z = gamma.reshape(1, -1, 1) * (y - mean) / jnp.sqrt(var + eps) + beta.reshape(1, -1, 1)
    z = jnp.maximum(z, 0.0)
    B, C, T = z.shape
    cpg = C // L
    lfeat = z.reshape(B, L, cpg, T).transpose(0, 2, 1, 3).reshape(B, C, T)
    g = lax.conv_general_dilated(lfeat, wt, window_strides=(1,), padding='VALID',
                                 dimension_numbers=('NCH', 'OIH', 'NCH'))
    g = g + tbias.reshape(1, -1, 1)
    return lfeat, g


if __name__ == "__main__":
    # Small shapes consistent with the module: x is (B, i_nc, T); i_nc, o_nc divisible by L.
    B, i_nc, o_nc, L, T, K = 4, 8, 8, 2, 16, 5

    key = jax.random.PRNGKey(0)
    k1, k2, k3, k4, k5, k6 = jax.random.split(key, 6)
    x = jax.random.normal(k1, (B, i_nc, T), jnp.float32)
    wg = 0.3 * jax.random.normal(k2, (o_nc, i_nc // L, K), jnp.float32)        # gconv.weight
    gamma = 1.0 + 0.1 * jax.random.normal(k3, (o_nc,), jnp.float32)            # bn.weight
    beta = 0.1 * jax.random.normal(k4, (o_nc,), jnp.float32)                   # bn.bias
    wt = 0.2 * jax.random.normal(k5, (o_nc // L, o_nc, T), jnp.float32)        # tgconv.weight
    tbias = 0.1 * jax.random.normal(k6, (o_nc // L,), jnp.float32)             # tgconv.bias

    # batch_tile=2 -> 2-step grid: exercises the tiled, pipelined, parallel path.
    l_feat, g_feat = tagg_block_forward(x, wg, gamma, beta, wt, tbias, L, batch_tile=2)
    jax.block_until_ready((l_feat, g_feat))

    l_exp, g_exp = ref_forward(x, wg, gamma, beta, wt, tbias, L)
    assert l_feat.shape == (B, o_nc, T) and g_feat.shape == (B, o_nc // L, 1)
    # bf16 MXU operands (f32 accumulation) -> relaxed tolerance vs. the f32 reference.
    assert jnp.allclose(l_feat, l_exp, atol=5e-2, rtol=5e-2)
    assert jnp.allclose(g_feat, g_exp, atol=5e-2, rtol=5e-2)
    print("KERNEL_OK")
</pallas_src>

<mosaic_0001>
module attributes {stable_mosaic.version = 11 : i64} {
  func.func @gconv_stats_kernel(%arg0: i32, %arg1: memref<2x16x40xbf16, #tpu.memory_space<vmem>>, %arg2: memref<40x8xbf16, #tpu.memory_space<vmem>>, %arg3: memref<2x16x8xf32, #tpu.memory_space<vmem>>, %arg4: memref<1x2x8xf32, #tpu.memory_space<vmem>>) attributes {dimension_semantics = [#tpu.dimension_semantics<parallel>], iteration_bounds = array<i64: 2>, scalar_prefetch = 0 : i64, scratch_operands = 0 : i64, tpu.core_type = #tpu.core_type<tc>, window_params = [{transform_indices = @transform_0, window_bounds = array<i64: 2, 16, 40>}, {pipeline_mode = #tpu.pipeline_mode<synchronous>, transform_indices = @transform_1, window_bounds = array<i64: 40, 8>}, {transform_indices = @transform_2, window_bounds = array<i64: 2, 16, 8>}, {transform_indices = @transform_3, window_bounds = array<i64: 1, 2, 8>}]} {
    %c0 = arith.constant 0 : index
    %c0_0 = arith.constant 0 : index
    %c0_1 = arith.constant 0 : index
    %0 = vector.load %arg1[%c0, %c0_0, %c0_1] : memref<2x16x40xbf16, #tpu.memory_space<vmem>>, vector<2x16x40xbf16>
    %1 = vector.shape_cast %0 : vector<2x16x40xbf16> to vector<32x40xbf16>
    %c0_2 = arith.constant 0 : index
    %c0_3 = arith.constant 0 : index
    %2 = vector.load %arg2[%c0_2, %c0_3] : memref<40x8xbf16, #tpu.memory_space<vmem>>, vector<40x8xbf16>
    %cst = arith.constant dense<0.000000e+00> : vector<32x8xf32>
    %3 = tpu.matmul %1, %2, %cst {dimension_numbers = #tpu.dot_dimension_numbers<[1], [0], [0], [1], [0, 0, 1, 1], [], []>} : vector<32x40xbf16>, vector<40x8xbf16>, vector<32x8xf32> -> vector<32x8xf32>
    %4 = vector.shape_cast %3 : vector<32x8xf32> to vector<2x16x8xf32>
    %c0_4 = arith.constant 0 : index
    %c0_5 = arith.constant 0 : index
    %c0_6 = arith.constant 0 : index
    %5 = vector.load %arg3[%c0_4, %c0_5, %c0_6] : memref<2x16x8xf32, #tpu.memory_space<vmem>>, vector<2x16x8xf32>
    tpu.vector_store %arg3[%c0_4, %c0_5, %c0_6], %4 {strides = array<i32>} : memref<2x16x8xf32, #tpu.memory_space<vmem>>, vector<2x16x8xf32>,
    %cst_7 = arith.constant dense<0.000000e+00> : vector<8xf32>
    %6 = vector.multi_reduction <add>, %3, %cst_7 [0] : vector<32x8xf32> to vector<8xf32>
    %7 = vector.shape_cast %6 : vector<8xf32> to vector<1x8xf32>
    %8 = arith.mulf %3, %3 : vector<32x8xf32>
    %cst_8 = arith.constant dense<0.000000e+00> : vector<8xf32>
    %9 = vector.multi_reduction <add>, %8, %cst_8 [0] : vector<32x8xf32> to vector<8xf32>
    %10 = vector.shape_cast %9 : vector<8xf32> to vector<1x8xf32>
    %11 = tpu.concatenate %7, %10 in 0 : vector<1x8xf32>, vector<1x8xf32> -> vector<2x8xf32>
    %12 = vector.shape_cast %11 : vector<2x8xf32> to vector<1x2x8xf32>
    %c0_9 = arith.constant 0 : index
    %c0_10 = arith.constant 0 : index
    %c0_11 = arith.constant 0 : index
    %13 = vector.load %arg4[%c0_9, %c0_10, %c0_11] : memref<1x2x8xf32, #tpu.memory_space<vmem>>, vector<1x2x8xf32>
    tpu.vector_store %arg4[%c0_9, %c0_10, %c0_11], %12 {strides = array<i32>} : memref<1x2x8xf32, #tpu.memory_space<vmem>>, vector<1x2x8xf32>,
    return
  }
  func.func @transform_0(%arg0: i32) -> (i32, i32, i32) {
    %c0_i32 = arith.constant 0 : i32
    %c0_i32_0 = arith.constant 0 : i32
    %c0_i32_1 = arith.constant 0 : i32
    return %arg0, %c0_i32, %c0_i32_0 : i32, i32, i32
  }
  func.func @transform_1(%arg0: i32) -> (i32, i32) {
    %c0_i32 = arith.constant 0 : i32
    %c0_i32_0 = arith.constant 0 : i32
    %c0_i32_1 = arith.constant 0 : i32
    return %c0_i32, %c0_i32_0 : i32, i32
  }
  func.func @transform_2(%arg0: i32) -> (i32, i32, i32) {
    %c0_i32 = arith.constant 0 : i32
    %c0_i32_0 = arith.constant 0 : i32
    %c0_i32_1 = arith.constant 0 : i32
    return %arg0, %c0_i32, %c0_i32_0 : i32, i32, i32
  }
  func.func @transform_3(%arg0: i32) -> (i32, i32, i32) {
    %c0_i32 = arith.constant 0 : i32
    %c0_i32_0 = arith.constant 0 : i32
    %c0_i32_1 = arith.constant 0 : i32
    return %arg0, %c0_i32, %c0_i32_0 : i32, i32, i32
  }
}

</mosaic_0001>

<bundles_post_ra>
// kernel: tpu_custom_call.1
= control target key start
LH: loop header
LB: loop body
LE: loop exit
PB: predicated region body
PF: predicated region fallthrough
CT: control target
= control target key end

     0   :  { %9 = vsyncpa [#allocation3], 0  ;;  %s847_s0 = inlined_call_operand.hbm [shape: bf16[4,16,40], index: 0, kind: input, shape index: {}]   ;;  %s848_s1 = inlined_call_operand.vmem [shape: bf16[40,8], index: 1, kind: input, shape index: {}]   ;;  %s849_s2 = inlined_call_operand.vmem [shape: f32[4,16,8], index: 2, kind: output, shape index: {0}]   ;;  %s850_s3 = inlined_call_operand.hbm [shape: f32[2,2,8], index: 3, kind: output, shape index: {1}]  }
   0x1   :  { %11 = vsyncpa [#allocation3 + $0x1], 0 }
   0x2   :  { %12 = vsyncpa [#allocation4], 0 }
   0x3   :  { %14 = vsyncpa [#allocation4 + $0x1], 0  ;;  %s675_s12 = smov 0   ;;  %s677_s13 = smov 0  }
   0x4   :  { %s679_s14 = smov 0   ;;  %s681_s15 = smov 0  }
   0x5 LB: > { %s696_s16 = sadd.s32 4294967295, %s649_s15   ;;  %s461_s17 = sadd.s32 4294967294, %s649_s15   ;;  %s649_s15 = sphi %s681_s15, %s865_s15   ;;  %s645_s14 = sphi %s679_s14, %s864_s14   ;;  %s641_s13 = sphi %s677_s13, %s863_s13   ;;  %s637_s12 = sphi %s675_s12, %s862_s12  }
   0x6   : > { %s700_s18 = sadd.s32 1, %s649_s15   ;;  %s27_s19 = sadd.s32 1, %s645_s14 }
   0x7   : > { %s24_s20 = ssub.s32 %s649_s15, %s700_s18  ;;  %p34_p0 = scmp.ne.s32.totalorder %s645_s14, %s641_s13 }
   0x8   : > { %p25_p1 = scmp.eq.s32.totalorder %s24_s20, 0  ;;  %p35_p2 = scmp.eq.s32.totalorder %s649_s15, 0 }
   0x9   : > { %p40_p3 = scmp.ne.s32.totalorder %s641_s13, %s637_s12  ;;  %p41_p4 = scmp.eq.s32.totalorder %s696_s16, 0 }
   0xa   : > { %s712_s21 = scalar_select %p25_p1, %s645_s14, %s27_s19  }
   0xb   : > { %p714_p5 = por %p35_p2, %p34_p0  ;;  %p718_p6 = por %p41_p4, %p40_p3 }
   0xc   : > { %p111_p7 = scmp.eq.s32.totalorder %s696_s16, 1  ;;  %p117_p8 = scmp.eq.s32.totalorder %s461_s17, 1 }
   0xd   : > { %s854_s23 = scalar_select %p718_p6, 1, 0 }
   0xe   : > { %p516_p10 = scmp.lt.s32.totalorder %s649_s15, 2  ;;  %p725_p11 = por %p111_p7, %p34_p0 }
   0xf   : > { %p729_p12 = por %p117_p8, %p40_p3  ;;  %s140_s26 = sand.u32 1, %s645_s14  }
  0x10   : > { %s855_s24 = scalar_select %p725_p11, 1, 0 }
  0x11   : > { %s856_s25 = scalar_select %p729_p12, 1, 0 }
  0x12   : > { %s486_s27 = sshll.u32 %s649_s15, 8  ;;  %s464_s28 = sshll.u32 %s140_s26, 4 }
  0x13   : > { %s738_s4 = scalar_lea.hbm %s847_s0, %s486_s27  ;;  %s144_s5 = scalar_lea.vmem [#allocation2], %s464_s28 }
  0x14   : > { %s152_s6 = sshll.u32 %s144_s5, 4  ;;  %p742_p13 = pnand %p516_p10, %p714_p5  ;;  %s746_s6 = int_to_ptr.vmem [resolvable:$true] %s152_s6 }
  0x15   : > { %s748_s8 = scalar_lea.sflag [#allocation3], %s140_s26  ;;  %s557_s9 = scalar_lea.hbm %s738_s4, 256 }
  0x16   : > { %p558_p0 = scmp.ne.s32.totalorder %s738_s4, %s557_s9  ;;  %p559_p1 = pneg %p742_p13 }
  0x17   : > { %s562_s17 = scalar_lea.hbm %s847_s0, 512  ;;  %p563_p4 = scmp.lt.s32.totalorder %s738_s4, %s847_s0 }
  0x18   : > { %p560_p2 = pnand %p559_p1, %p558_p0  ;;  %p564_p5 = scmp.lt.s32.totalorder %s562_s17, %s557_s9 }
  0x1a   : > { %p561_p3 = pneg %p560_p2  ;;  %p565_p7 = por %p564_p5, %p563_p4 }
  0x1c   : > { %p566_p8 = pnand %p565_p7, %p561_p3 }
  0x1e   : > { %569 = shalt.err (!%p566_p8)
}
  0x1f   : > { %s570_s22 = scalar_lea.vmem %s746_s6, 256  ;;  %s651_s26 = smov [#allocation2]  }
  0x20   : > { %p571_p10 = scmp.ne.s32.totalorder %s746_s6, %s570_s22  ;;  %s575_s27 = sshll.u32 %s651_s26, 4  ;;  %s576_s27 = int_to_ptr.vmem [resolvable:$false] %s575_s27 }
  0x21   : > { %s577_s28 = scalar_lea.vmem %s576_s27, 512  ;;  %p578_p2 = scmp.lt.s32.totalorder %s746_s6, %s576_s27 }
  0x22   : > { %p573_p9 = pnand %p571_p10, %p559_p1  ;;  %p579_p12 = scmp.lt.s32.totalorder %s577_s28, %s570_s22 }
  0x24   : > { %p574_p0 = pneg %p573_p9  ;;  %p580_p11 = por %p579_p12, %p578_p2 }
  0x26   : > { %p581_p6 = pnand %p580_p11, %p574_p0 }
  0x28   : > { %584 = shalt.err (!%p581_p6)
}
  0x29   : > { %s652_s29 = smov 64   ;;  %s653_s30 = smov 4  }
  0x2a   : > { %511 = dma.hbm_to_vmem [thread:$0]  (!%p742_p13), %s738_s4, 256, %s746_s6, %s748_s8, %s652_s29, %s652_s29, %s653_s30  }
  0x2b   : > { %p468_p9 = scmp.ge.s32.totalorder %s649_s15, 1  ;;  %p160_p1 = scmp.lt.s32.totalorder %s649_s15, 3 }
  0x2d   : > { %p161_p3 = pnand %p468_p9, %p160_p1 }
  0x2e   : > { %s772_s5 = sand.u32 (!%p161_p3), 1, %s641_s13   ;;  %p858_p6 = scmp.ne.s32.totalorder (!%p161_p3), %s854_s23, 0 }
  0x2f   : > { %164 = sbr.rel (%p161_p3) target bundleno = 300 (0x12c), region = 28  ;;  %s469_s9 = sshll.u32 (!%p161_p3), %s772_s5, 4 }
  0x30   : > { %s167_s10 = scalar_lea.sflag (!%p161_p3), [#allocation3], %s772_s5  ;;  %s170_s11 = scalar_lea.vmem (!%p161_p3), [#allocation2], %s469_s9 }
  0x34   : > { %628 = dma.done.wait (%p858_p6), %s167_s10, 256  }
  0x35   : > { %630 = vsyncadd (%p858_p6), %s167_s10, 4294967040  ;;  %vm249_vm0 = vcmask 1043456   ;;  %v552_v0 = vld [vmem:[%s848_s1 + $0x10] ss:$0 sps:$4 sm:$0xff]   ;;  %v553_v1 = vld [vmem:[%s848_s1 + $0x8] sm:$0xff]   ;;  %vm242_vm1 = vcmask 326656  }
  0x36   : > { %503 = vmatprep.subr.msk.bf16.mxu0 %vm249_vm0, %v552_v0  ;;  %v251_v2 = vsel %vm249_vm0, %v552_v0, 0  ;;  %v555_v3 = vld [vmem:[%s170_s11] sm:$0xff]   ;;  %v556_v5 = vld [vmem:[%s170_s11 + $0x8] sm:$0xff]   ;;  %s471_s23 = sshll.u32 %s696_s16, 1  ;;  %vm302_vm2 = vcmask 64512   ;;  %s470_s28 = sshll.u32 %s772_s5, 1 }
  0x37   : > { %494 = vmatpush3.bf16.msra.mxu0 %v251_v2  ;;  %v554_v4 = vld [vmem:[%s848_s1] sm:$0xff]   ;;  %499 = vmatprep.mubr.msk.bf16.mxu0 %vm242_vm1, %v555_v3  ;;  %p201_p11 = scmp.lt.s32.totalorder %s471_s23, 3  ;;  %s482_s29 = sshll.u32 %s696_s16, 5  ;;  %vm337_vm3 = vcmask 1040384   ;;  %vm339_vm4 = vcmask 58368  }
  0x38   : > { %495 = vmatprep.subr.bf16.mxu0 %v553_v1  ;;  %s198_s30 = scalar_lea.vmem [#allocation5], %s470_s28  ;;  %s810_s4 = scalar_lea.hbm %s850_s3, %s482_s29 }
  0x39   : > { %s867_s23 = smov (!%p201_p11, %s471_s23), 3  ;;  %s365_s9 = sshll.u32 %s198_s30, 4  ;;  %s366_s9 = int_to_ptr.vmem [resolvable:$true] %s365_s9 }
  0x3a   : > { %s487_s20 = sshll.u32 %s867_s23, 4  ;;  %s348_s6 = scalar_lea.sflag [#allocation4], %s772_s5 }
  0x3b   : > { %496 = vmatpush3.bf16.msra.mxu0 %v553_v1  ;;  %s205_s27 = scalar_lea.vmem %s849_s2, %s487_s20  ;;  %s585_s7 = scalar_lea.vmem %s366_s9, 32 }
  0x3c   : > { %497 = vmatprep.subr.bf16.mxu0 %v554_v4  ;;  %p586_p12 = scmp.ne.s32.totalorder %s366_s9, %s585_s7  ;;  %p859_p13 = scmp.ne.s32.totalorder %s855_s24, 0 }
  0x3d   : > { %s654_s16 = smov [#allocation5]  }
  0x3e   : > { %p587_p4 = pnand %p586_p12, %p859_p13  ;;  %s589_s8 = sshll.u32 %s654_s16, 4  ;;  %s590_s8 = int_to_ptr.vmem [resolvable:$false] %s589_s8 }
  0x3f   : > { %498 = vmatpush3.bf16.msra.mxu0 %v554_v4  ;;  %s591_s17 = scalar_lea.vmem %s590_s8, 64  ;;  %p592_p7 = scmp.lt.s32.totalorder %s366_s9, %s590_s8 }
  0x40   : > { %p588_p5 = pneg %p587_p4  ;;  %p593_p8 = scmp.lt.s32.totalorder %s591_s17, %s585_s7 }
  0x42   : > { %500 = vmatmul.mubr.msk.bf16.vlgmr.msra.gmra.mxu0 %vm242_vm1, %v556_v5  ;;  %p594_p10 = por %p593_p8, %p592_p7 }
  0x44   : > { %p595_p0 = pnand %p594_p10, %p588_p5 }
 0x102   : > { %v501_v6 = vpop.f32.mrf.mxu0 }
 0x103   : > { %305 = vst.msk [vmem:[%s205_s27 + $0x10] sm:$0xff] %vm302_vm2, %v501_v6  ;;  %v322_v11 = vmul.f32 %v501_v6, %v501_v6  ;;  %v310_v16 = vsel %vm302_vm2, %v501_v6, 0.0 }
 0x104   : > { %v287_v7 = vpop.f32.mrf.mxu0 }
 0x105   : > { %303 = vst.msk [vmem:[%s205_s27] sm:$0xff] %vm302_vm2, %v287_v7  ;;  %v320_v9 = vmul.f32 %v287_v7, %v287_v7  ;;  %v307_v12 = vsel %vm302_vm2, %v287_v7, 0.0  ;;  %v327_v22 = vsel %vm302_vm2, %v322_v11, 0.0 }
 0x106   : > { %v502_v8 = vpop.f32.mrf.mxu0 }
 0x107   : > { %306 = vst.msk [vmem:[%s205_s27 + $0x18] sm:$0xff] %vm302_vm2, %v502_v8  ;;  %v324_v17 = vsel %vm302_vm2, %v320_v9, 0.0  ;;  %v323_v18 = vmul.f32 %v502_v8, %v502_v8  ;;  %v312_v23 = vsel %vm302_vm2, %v502_v8, 0.0 }
 0x108   : > { %v290_v10 = vpop.f32.mrf.mxu0 }
 0x109   : > { %304 = vst.msk [vmem:[%s205_s27 + $0x8] sm:$0xff] %vm302_vm2, %v290_v10  ;;  %v308_v13 = vsel %vm302_vm2, %v290_v10, 0.0  ;;  %v321_v14 = vmul.f32 %v290_v10, %v290_v10  ;;  %v329_v26 = vsel %vm302_vm2, %v323_v18, 0.0 }
 0x10a   : > { %v309_v15 = vadd.f32 %v308_v13, %v307_v12 }
 0x10b   : > { %v325_v19 = vsel %vm302_vm2, %v321_v14, 0.0 }
 0x10c   : > { %v311_v20 = vadd.f32 %v310_v16, %v309_v15  ;;  %v326_v21 = vadd.f32 %v325_v19, %v324_v17 }
 0x10e   : > { %v313_v24 = vadd.f32 %v312_v23, %v311_v20  ;;  %v328_v25 = vadd.f32 %v327_v22, %v326_v21 }
 0x110   : > { %v314_v27 = vrot.slane %v313_v24, 4  ;;  %v330_v28 = vadd.f32 %v329_v26, %v328_v25 }
 0x112   : > { %v315_v29 = vadd.f32 %v314_v27, %v313_v24  ;;  %v331_v30 = vrot.slane %v330_v28, 4 }
 0x114   : > { %v316_v31 = vrot.slane %v315_v29, 2  ;;  %v332_v32 = vadd.f32 %v331_v30, %v330_v28 }
 0x116   : > { %v317_v33 = vadd.f32 %v316_v31, %v315_v29  ;;  %v333_v34 = vrot.slane %v332_v32, 2 }
 0x118   : > { %v318_v35 = vrot.slane %v317_v33, 1  ;;  %v334_v36 = vadd.f32 %v333_v34, %v332_v32 }
 0x11a   : > { %v335_v37 = vrot.slane %v334_v36, 1  ;;  %v319_v38 = vadd.f32 %v318_v35, %v317_v33 }
 0x11c   : > { %v336_v39 = vadd.f32 %v335_v37, %v334_v36 }
 0x11e   : > { %v338_v40 = vsel %vm337_vm3, %v319_v38, %v336_v39 }
 0x11f   : > { %340 = vst.msk [vmem:[%s198_s30] sm:$0x3] %vm339_vm4, %v338_v40 }
 0x120   : > { %598 = shalt.err (!%p595_p0)
}
 0x121   : > { %s599_s19 = scalar_lea.hbm %s810_s4, 32  ;;  %s603_s20 = scalar_lea.hbm %s850_s3, 64 }
 0x122   : > { %p600_p2 = scmp.ne.s32.totalorder %s810_s4, %s599_s19  ;;  %p604_p3 = scmp.lt.s32.totalorder %s810_s4, %s850_s3 }
 0x123   : > { %p605_p6 = scmp.lt.s32.totalorder %s603_s20, %s599_s19 }
 0x124   : > { %p601_p9 = pnand %p600_p2, %p859_p13 }
 0x125   : > { %p606_p11 = por %p605_p6, %p604_p3 }
 0x126   : > { %p602_p1 = pneg %p601_p9 }
 0x128   : > { %p607_p12 = pnand %p606_p11, %p602_p1 }
 0x12a   : > { %610 = shalt.err (!%p607_p12)
}
 0x12b   : > { %506 = dma.vmem_to_hbm [thread:$0]  (%p859_p13), %s366_s9, 32, %s810_s4, %s348_s6  }
 0x12c PF: > { %s386_s27 = sand.u32 1, %s637_s12   ;;  %p860_p4 = scmp.ne.s32.totalorder %s856_s25, 0 }
 0x12d   : > { %p861_p5 = scmp.ge.s32.totalorder %s649_s15, 2  ;;  %s387_s28 = scalar_lea.sflag [#allocation4], %s386_s27 }
 0x12f   : > { %p513_p7 = pnand %p861_p5, %p860_p4 }
 0x131   : > { %p514_p8 = pneg %p513_p7 }
 0x133   : > { %632 = dma.done.wait (%p514_p8), %s387_s28, 32  }
 0x134   : > { %634 = vsyncadd (%p514_p8), %s387_s28, 4294967264  ;;  %p17_p10 = scmp.ge.s32.totalorder %s700_s18, 4   ;;  %s862_s12 = smov %s641_s13 }
 0x135   : > { %s863_s13 = smov %s645_s14  ;;  %s864_s14 = smov %s712_s21 }
 0x136   : > { %s865_s15 = smov %s700_s18  ;;  %19 = sbr.rel (!%p17_p10) target bundleno = 5 (0x5), region = 85 }
 0x13b   :  { %392 = vsyncpa [#allocation3], 1 }
 0x13c   :  { %394 = vsyncpa [#allocation3 + $0x1], 1 }
 0x13d   :  { %395 = vsyncpa [#allocation4], 1 }
 0x13e   :  { %397 = vsyncpa [#allocation4 + $0x1], 1 }

</bundles_post_ra>
